<compile_context>
chip_gen: v7x
topology: tpu7x:2x2x1
jax: 0.10.0
libtpu: 0.0.40
codegen_flags: <defaults>
</compile_context>

<pallas_src>
from functools import partial

import jax
import jax.numpy as jnp
from jax.experimental import pallas as pl
from jax.experimental.pallas import tpu as pltpu


def fca_kernel(x_ref, wdw_ref, bdw_ref, w1_ref, b1_ref, w2_ref, b2_ref,
               out_ref, max_acc, sum_acc, *, inv_hw):
    # x_ref block: (TB, C, THW) -- TB batch images, one spatial chunk.
    k = pl.program_id(1)

    @pl.when(k == 0)
    def _():
        max_acc[...] = jnp.full_like(max_acc, -jnp.inf)
        sum_acc[...] = jnp.zeros_like(sum_acc)

    x = x_ref[...]                                           # (TB, C, THW)
    max_acc[...] = jnp.maximum(max_acc[...], jnp.max(x, axis=-1))   # (TB, C)
    sum_acc[...] = sum_acc[...] + jnp.sum(x, axis=-1, dtype=jnp.float32)

    @pl.when(k == pl.num_programs(1) - 1)
    def _():
        max_pool = max_acc[...]                              # (TB, C)
        avg_pool = sum_acc[...] * inv_hw                     # (TB, C)

        # Depthwise (2,1) conv on concat([max, avg], dim=2):
        #   v[b, c] = w_dw[c, 0] * max[b, c] + w_dw[c, 1] * avg[b, c] + b_dw[c]
        v = (wdw_ref[0:1, :] * max_pool
             + wdw_ref[1:2, :] * avg_pool
             + bdw_ref[...])                                 # (TB, C)

        # Two 1x1 convs == two dense layers over the channel axis.
        h = jnp.dot(v, w1_ref[...], preferred_element_type=jnp.float32) + b1_ref[...]
        h = jnp.maximum(h, 0.0)                              # ReLU, (TB, Cr)
        o = jnp.dot(h, w2_ref[...], preferred_element_type=jnp.float32) + b2_ref[...]
        o = jax.nn.sigmoid(o)                                # (TB, C)

        out_ref[...] = o.astype(out_ref.dtype)


def _choose_spatial_tile(hw, tb, c, bytes_per_elem=4, target_bytes=2 * 1024 * 1024):
    """Largest multiple-of-128 divisor of hw with tile bytes <= target."""
    if hw % 128 != 0:
        return hw  # full-extent last dim is always a legal block
    max_rows = max(128, target_bytes // (tb * c * bytes_per_elem))
    thw = 128
    cand = 256
    while cand <= hw and cand <= max_rows:
        if hw % cand == 0:
            thw = cand
        cand += 128
    return thw


def fca_forward(x_nchw, params):
    """x_nchw: (B, C, H, W) float32. Returns (B, C, 1, 1) channel weights."""
    wdw, bdw, w1, b1, w2, b2 = params
    B, C, H, W = x_nchw.shape
    HW = H * W
    Cr = w1.shape[1]

    # Free reshape (no transpose, no HBM traffic): channels stay the 2nd dim,
    # spatial positions collapse into the trailing (lane) axis.
    x = x_nchw.reshape(B, C, HW)

    # Batch tile: amortizes per-grid-step overhead and densifies the matmul /
    # store.  TB == B (block == full dim, always legal) or a multiple of 8.
    TB = 8 if (B % 8 == 0) else B
    THW = _choose_spatial_tile(HW, TB, C)
    n_k = HW // THW

    weight_bytes = (wdw.size + bdw.size + w1.size + b1.size + w2.size + b2.size) * 4
    cost = pl.CostEstimate(
        flops=2 * B * C * HW + 4 * B * C * Cr + 4 * B * C,
        transcendentals=B * C,
        bytes_accessed=B * C * HW * 4 + weight_bytes + B * C * 4,
    )

    out = pl.pallas_call(
        partial(fca_kernel, inv_hw=1.0 / float(HW)),
        out_shape=jax.ShapeDtypeStruct((B, C), jnp.float32),
        grid_spec=pltpu.PrefetchScalarGridSpec(
            num_scalar_prefetch=0,
            grid=(B // TB, n_k),
            in_specs=[
                pl.BlockSpec((TB, C, THW), lambda b, k: (b, 0, k)),  # x chunk
                pl.BlockSpec((2, C), lambda b, k: (0, 0)),           # dw weight (row0=max, row1=avg)
                pl.BlockSpec((1, C), lambda b, k: (0, 0)),           # dw bias
                pl.BlockSpec((C, Cr), lambda b, k: (0, 0)),          # mlp[0] weight
                pl.BlockSpec((1, Cr), lambda b, k: (0, 0)),          # mlp[0] bias
                pl.BlockSpec((Cr, C), lambda b, k: (0, 0)),          # mlp[2] weight
                pl.BlockSpec((1, C), lambda b, k: (0, 0)),           # mlp[2] bias
            ],
            out_specs=pl.BlockSpec((TB, C), lambda b, k: (b, 0)),
            scratch_shapes=[
                pltpu.VMEM((TB, C), jnp.float32),   # running max
                pltpu.VMEM((TB, C), jnp.float32),   # running sum
            ],
        ),
        compiler_params=pltpu.CompilerParams(
            dimension_semantics=("parallel", "arbitrary")),
        cost_estimate=cost,
    )(x, wdw, bdw, w1, b1, w2, b2)

    return out.reshape(B, C, 1, 1)


def init_params(key, gate_channels, reduction_ratio):
    """Deterministic synthetic parameters, shapes match the PyTorch module.

    PyTorch shapes -> kernel layout:
      conv2x1.weight (C, 1, 2, 1) -> (2, C)  [row 0 hits max_pool, row 1 hits avg_pool]
      conv2x1.bias   (C,)         -> (1, C)
      mlp[0].weight  (Cr, C, 1, 1)-> (C, Cr)
      mlp[0].bias    (Cr,)        -> (1, Cr)
      mlp[2].weight  (C, Cr, 1, 1)-> (Cr, C)
      mlp[2].bias    (C,)         -> (1, C)
    """
    C = gate_channels
    Cr = gate_channels // reduction_ratio
    ks = jax.random.split(key, 6)
    wdw = jax.random.normal(ks[0], (2, C), jnp.float32) * 0.5
    bdw = jax.random.normal(ks[1], (1, C), jnp.float32) * 0.1
    w1 = jax.random.normal(ks[2], (C, Cr), jnp.float32) * (1.0 / jnp.sqrt(C))
    b1 = jax.random.normal(ks[3], (1, Cr), jnp.float32) * 0.1
    w2 = jax.random.normal(ks[4], (Cr, C), jnp.float32) * (1.0 / jnp.sqrt(Cr))
    b2 = jax.random.normal(ks[5], (1, C), jnp.float32) * 0.1
    return (wdw, bdw, w1, b1, w2, b2)


def fca_reference(x_nchw, params):
    """Pure-JAX reference matching the PyTorch semantics."""
    wdw, bdw, w1, b1, w2, b2 = params
    B, C, H, W = x_nchw.shape
    max_pool = jnp.max(x_nchw, axis=(2, 3))      # (B, C)
    avg_pool = jnp.mean(x_nchw, axis=(2, 3))     # (B, C)
    v = wdw[0] * max_pool + wdw[1] * avg_pool + bdw[0]
    h = jnp.maximum(v @ w1 + b1[0], 0.0)
    o = jax.nn.sigmoid(h @ w2 + b2[0])
    return o.reshape(B, C, 1, 1)


if __name__ == "__main__":
    B, C, H, W = 2, 32, 16, 16
    reduction_ratio = 4  # -> hidden = 8

    key = jax.random.PRNGKey(0)
    kx, kp = jax.random.split(key)
    x = jax.random.normal(kx, (B, C, H, W), jnp.float32)
    params = init_params(kp, C, reduction_ratio)

    out = fca_forward(x, params)
    out = jax.block_until_ready(out)

    ref = fca_reference(x, params)
    assert out.shape == (B, C, 1, 1)
    assert jnp.allclose(out, ref, atol=1e-5, rtol=1e-5), "mismatch vs reference"

    print("KERNEL_OK")
</pallas_src>

<mosaic_0001>
module attributes {stable_mosaic.version = 11 : i64} {
  func.func @fca_kernel(%arg0: i32, %arg1: i32, %arg2: memref<2x32x256xf32, #tpu.memory_space<vmem>>, %arg3: memref<2x32xf32, #tpu.memory_space<vmem>>, %arg4: memref<1x32xf32, #tpu.memory_space<vmem>>, %arg5: memref<32x8xf32, #tpu.memory_space<vmem>>, %arg6: memref<1x8xf32, #tpu.memory_space<vmem>>, %arg7: memref<8x32xf32, #tpu.memory_space<vmem>>, %arg8: memref<1x32xf32, #tpu.memory_space<vmem>>, %arg9: memref<2x32xf32, #tpu.memory_space<vmem>>, %arg10: memref<2x32xf32, #tpu.memory_space<vmem>>, %arg11: memref<2x32xf32, #tpu.memory_space<vmem>>) attributes {dimension_semantics = [#tpu.dimension_semantics<parallel>, #tpu.dimension_semantics<arbitrary>], iteration_bounds = array<i64: 1, 1>, scalar_prefetch = 0 : i64, scratch_operands = 2 : i64, tpu.core_type = #tpu.core_type<tc>, window_params = [{transform_indices = @transform_0, window_bounds = array<i64: 2, 32, 256>}, {pipeline_mode = #tpu.pipeline_mode<synchronous>, transform_indices = @transform_1, window_bounds = array<i64: 2, 32>}, {pipeline_mode = #tpu.pipeline_mode<synchronous>, transform_indices = @transform_2, window_bounds = array<i64: 1, 32>}, {pipeline_mode = #tpu.pipeline_mode<synchronous>, transform_indices = @transform_3, window_bounds = array<i64: 32, 8>}, {pipeline_mode = #tpu.pipeline_mode<synchronous>, transform_indices = @transform_4, window_bounds = array<i64: 1, 8>}, {pipeline_mode = #tpu.pipeline_mode<synchronous>, transform_indices = @transform_5, window_bounds = array<i64: 8, 32>}, {pipeline_mode = #tpu.pipeline_mode<synchronous>, transform_indices = @transform_6, window_bounds = array<i64: 1, 32>}, {transform_indices = @transform_7, window_bounds = array<i64: 2, 32>}]} {
    %c0_i32 = arith.constant 0 : i32
    %0 = arith.cmpi eq, %arg1, %c0_i32 : i32
    %1 = arith.extui %0 : i1 to i32
    %c0_i32_0 = arith.constant 0 : i32
    %2 = arith.cmpi ne, %1, %c0_i32_0 : i32
    scf.if %2 {
      %cst_14 = arith.constant 0xFF800000 : f32
      %15 = vector.broadcast %cst_14 : f32 to vector<2x32xf32>
      %c0_15 = arith.constant 0 : index
      %c0_16 = arith.constant 0 : index
      %16 = vector.load %arg10[%c0_15, %c0_16] : memref<2x32xf32, #tpu.memory_space<vmem>>, vector<2x32xf32>
      tpu.vector_store %arg10[%c0_15, %c0_16], %15 {strides = array<i32>} : memref<2x32xf32, #tpu.memory_space<vmem>>, vector<2x32xf32>,
      %cst_17 = arith.constant 0.000000e+00 : f32
      %17 = vector.broadcast %cst_17 : f32 to vector<2x32xf32>
      %c0_18 = arith.constant 0 : index
      %c0_19 = arith.constant 0 : index
      %18 = vector.load %arg11[%c0_18, %c0_19] : memref<2x32xf32, #tpu.memory_space<vmem>>, vector<2x32xf32>
      tpu.vector_store %arg11[%c0_18, %c0_19], %17 {strides = array<i32>} : memref<2x32xf32, #tpu.memory_space<vmem>>, vector<2x32xf32>,
    } else {
    }
    %c0 = arith.constant 0 : index
    %c0_1 = arith.constant 0 : index
    %c0_2 = arith.constant 0 : index
    %3 = vector.load %arg2[%c0, %c0_1, %c0_2] : memref<2x32x256xf32, #tpu.memory_space<vmem>>, vector<2x32x256xf32>
    %c0_3 = arith.constant 0 : index
    %c0_4 = arith.constant 0 : index
    %4 = vector.load %arg10[%c0_3, %c0_4] : memref<2x32xf32, #tpu.memory_space<vmem>>, vector<2x32xf32>
    %cst = arith.constant dense<0xFF800000> : vector<2x32xf32>
    %5 = vector.multi_reduction <maximumf>, %3, %cst [2] : vector<2x32x256xf32> to vector<2x32xf32>
    %6 = arith.maximumf %4, %5 : vector<2x32xf32>
    %c0_5 = arith.constant 0 : index
    %c0_6 = arith.constant 0 : index
    %7 = vector.load %arg10[%c0_5, %c0_6] : memref<2x32xf32, #tpu.memory_space<vmem>>, vector<2x32xf32>
    tpu.vector_store %arg10[%c0_5, %c0_6], %6 {strides = array<i32>} : memref<2x32xf32, #tpu.memory_space<vmem>>, vector<2x32xf32>,
    %c0_7 = arith.constant 0 : index
    %c0_8 = arith.constant 0 : index
    %8 = vector.load %arg11[%c0_7, %c0_8] : memref<2x32xf32, #tpu.memory_space<vmem>>, vector<2x32xf32>
    %cst_9 = arith.constant dense<0.000000e+00> : vector<2x32xf32>
    %9 = vector.multi_reduction <add>, %3, %cst_9 [2] : vector<2x32x256xf32> to vector<2x32xf32>
    %10 = arith.addf %8, %9 : vector<2x32xf32>
    %c0_10 = arith.constant 0 : index
    %c0_11 = arith.constant 0 : index
    %11 = vector.load %arg11[%c0_10, %c0_11] : memref<2x32xf32, #tpu.memory_space<vmem>>, vector<2x32xf32>
    tpu.vector_store %arg11[%c0_10, %c0_11], %10 {strides = array<i32>} : memref<2x32xf32, #tpu.memory_space<vmem>>, vector<2x32xf32>,
    %c0_i32_12 = arith.constant 0 : i32
    %12 = arith.cmpi eq, %arg1, %c0_i32_12 : i32
    %13 = arith.extui %12 : i1 to i32
    %c0_i32_13 = arith.constant 0 : i32
    %14 = arith.cmpi ne, %13, %c0_i32_13 : i32
    scf.if %14 {
      %c0_14 = arith.constant 0 : index
      %c0_15 = arith.constant 0 : index
      %15 = vector.load %arg10[%c0_14, %c0_15] : memref<2x32xf32, #tpu.memory_space<vmem>>, vector<2x32xf32>
      %c0_16 = arith.constant 0 : index
      %c0_17 = arith.constant 0 : index
      %16 = vector.load %arg11[%c0_16, %c0_17] : memref<2x32xf32, #tpu.memory_space<vmem>>, vector<2x32xf32>
      %cst_18 = arith.constant 3.906250e-03 : f32
      %17 = vector.broadcast %cst_18 : f32 to vector<2x32xf32>
      %18 = arith.mulf %16, %17 : vector<2x32xf32>
      %c0_19 = arith.constant 0 : index
      %c0_20 = arith.constant 0 : index
      %19 = vector.load %arg3[%c0_19, %c0_20] : memref<2x32xf32, #tpu.memory_space<vmem>>, vector<1x32xf32>
      %20 = vector.broadcast %19 : vector<1x32xf32> to vector<2x32xf32>
      %21 = arith.mulf %20, %15 : vector<2x32xf32>
      %c1 = arith.constant 1 : index
      %c0_21 = arith.constant 0 : index
      %22 = vector.load %arg3[%c1, %c0_21] : memref<2x32xf32, #tpu.memory_space<vmem>>, vector<1x32xf32>
      %23 = vector.broadcast %22 : vector<1x32xf32> to vector<2x32xf32>
      %24 = arith.mulf %23, %18 : vector<2x32xf32>
      %25 = arith.addf %21, %24 : vector<2x32xf32>
      %c0_22 = arith.constant 0 : index
      %c0_23 = arith.constant 0 : index
      %26 = vector.load %arg4[%c0_22, %c0_23] : memref<1x32xf32, #tpu.memory_space<vmem>>, vector<1x32xf32>
      %27 = vector.broadcast %26 : vector<1x32xf32> to vector<2x32xf32>
      %28 = arith.addf %25, %27 : vector<2x32xf32>
      %c0_24 = arith.constant 0 : index
      %c0_25 = arith.constant 0 : index
      %29 = vector.load %arg5[%c0_24, %c0_25] : memref<32x8xf32, #tpu.memory_space<vmem>>, vector<32x8xf32>
      %cst_26 = arith.constant dense<0.000000e+00> : vector<2x8xf32>
      %30 = tpu.matmul %28, %29, %cst_26 {dimension_numbers = #tpu.dot_dimension_numbers<[1], [0], [0], [1], [0, 0, 1, 1], [], []>} : vector<2x32xf32>, vector<32x8xf32>, vector<2x8xf32> -> vector<2x8xf32>
      %c0_27 = arith.constant 0 : index
      %c0_28 = arith.constant 0 : index
      %31 = vector.load %arg6[%c0_27, %c0_28] : memref<1x8xf32, #tpu.memory_space<vmem>>, vector<1x8xf32>
      %32 = vector.broadcast %31 : vector<1x8xf32> to vector<2x8xf32>
      %33 = arith.addf %30, %32 : vector<2x8xf32>
      %cst_29 = arith.constant 0.000000e+00 : f32
      %34 = vector.broadcast %cst_29 : f32 to vector<2x8xf32>
      %35 = arith.maximumf %33, %34 : vector<2x8xf32>
      %c0_30 = arith.constant 0 : index
      %c0_31 = arith.constant 0 : index
      %36 = vector.load %arg7[%c0_30, %c0_31] : memref<8x32xf32, #tpu.memory_space<vmem>>, vector<8x32xf32>
      %cst_32 = arith.constant dense<0.000000e+00> : vector<2x32xf32>
      %37 = tpu.matmul %35, %36, %cst_32 {dimension_numbers = #tpu.dot_dimension_numbers<[1], [0], [0], [1], [0, 0, 1, 1], [], []>} : vector<2x8xf32>, vector<8x32xf32>, vector<2x32xf32> -> vector<2x32xf32>
      %c0_33 = arith.constant 0 : index
      %c0_34 = arith.constant 0 : index
      %38 = vector.load %arg8[%c0_33, %c0_34] : memref<1x32xf32, #tpu.memory_space<vmem>>, vector<1x32xf32>
      %39 = vector.broadcast %38 : vector<1x32xf32> to vector<2x32xf32>
      %40 = arith.addf %37, %39 : vector<2x32xf32>
      %41 = arith.negf %40 : vector<2x32xf32>
      %42 = math.exp %41 : vector<2x32xf32>
      %cst_35 = arith.constant 1.000000e+00 : f32
      %43 = vector.broadcast %cst_35 : f32 to vector<2x32xf32>
      %44 = arith.addf %43, %42 : vector<2x32xf32>
      %45 = arith.divf %43, %44 : vector<2x32xf32>
      %c0_36 = arith.constant 0 : index
      %c0_37 = arith.constant 0 : index
      %46 = vector.load %arg9[%c0_36, %c0_37] : memref<2x32xf32, #tpu.memory_space<vmem>>, vector<2x32xf32>
      tpu.vector_store %arg9[%c0_36, %c0_37], %45 {strides = array<i32>} : memref<2x32xf32, #tpu.memory_space<vmem>>, vector<2x32xf32>,
    } else {
    }
    return
  }
  func.func @transform_0(%arg0: i32, %arg1: i32) -> (i32, i32, i32) {
    %c0_i32 = arith.constant 0 : i32
    %c0_i32_0 = arith.constant 0 : i32
    return %arg0, %c0_i32, %arg1 : i32, i32, i32
  }
  func.func @transform_1(%arg0: i32, %arg1: i32) -> (i32, i32) {
    %c0_i32 = arith.constant 0 : i32
    %c0_i32_0 = arith.constant 0 : i32
    %c0_i32_1 = arith.constant 0 : i32
    return %c0_i32, %c0_i32_0 : i32, i32
  }
  func.func @transform_2(%arg0: i32, %arg1: i32) -> (i32, i32) {
    %c0_i32 = arith.constant 0 : i32
    %c0_i32_0 = arith.constant 0 : i32
    %c0_i32_1 = arith.constant 0 : i32
    return %c0_i32, %c0_i32_0 : i32, i32
  }
  func.func @transform_3(%arg0: i32, %arg1: i32) -> (i32, i32) {
    %c0_i32 = arith.constant 0 : i32
    %c0_i32_0 = arith.constant 0 : i32
    %c0_i32_1 = arith.constant 0 : i32
    return %c0_i32, %c0_i32_0 : i32, i32
  }
  func.func @transform_4(%arg0: i32, %arg1: i32) -> (i32, i32) {
    %c0_i32 = arith.constant 0 : i32
    %c0_i32_0 = arith.constant 0 : i32
    %c0_i32_1 = arith.constant 0 : i32
    return %c0_i32, %c0_i32_0 : i32, i32
  }
  func.func @transform_5(%arg0: i32, %arg1: i32) -> (i32, i32) {
    %c0_i32 = arith.constant 0 : i32
    %c0_i32_0 = arith.constant 0 : i32
    %c0_i32_1 = arith.constant 0 : i32
    return %c0_i32, %c0_i32_0 : i32, i32
  }
  func.func @transform_6(%arg0: i32, %arg1: i32) -> (i32, i32) {
    %c0_i32 = arith.constant 0 : i32
    %c0_i32_0 = arith.constant 0 : i32
    %c0_i32_1 = arith.constant 0 : i32
    return %c0_i32, %c0_i32_0 : i32, i32
  }
  func.func @transform_7(%arg0: i32, %arg1: i32) -> (i32, i32) {
    %c0_i32 = arith.constant 0 : i32
    %c0_i32_0 = arith.constant 0 : i32
    return %arg0, %c0_i32 : i32, i32
  }
}

</mosaic_0001>

<bundles_post_ra>
// kernel: tpu_custom_call.1
= control target key start
LH: loop header
LB: loop body
LE: loop exit
PB: predicated region body
PF: predicated region fallthrough
CT: control target
= control target key end

     0   :  { %12 = vsyncpa [#allocation5], 0  ;;  %s659_s0 = inlined_call_operand.hbm [shape: f32[2,32,256], index: 0, kind: input, shape index: {}]   ;;  %s660_s1 = inlined_call_operand.vmem [shape: f32[2,32], index: 1, kind: input, shape index: {}]   ;;  %s661_s2 = inlined_call_operand.vmem [shape: f32[1,32], index: 2, kind: input, shape index: {}]   ;;  %s662_s3 = inlined_call_operand.vmem [shape: f32[32,8], index: 3, kind: input, shape index: {}]   ;;  %s663_s4 = inlined_call_operand.vmem [shape: f32[1,8], index: 4, kind: input, shape index: {}]   ;;  %s664_s5 = inlined_call_operand.vmem [shape: f32[8,32], index: 5, kind: input, shape index: {}]   ;;  %s665_s6 = inlined_call_operand.vmem [shape: f32[1,32], index: 6, kind: input, shape index: {}]   ;;  %s666_s7 = inlined_call_operand.hbm [shape: f32[2,32], index: 7, kind: output, shape index: {}]  }
   0x1   :  { %13 = vsyncpa [#allocation6], 0  ;;  %s538_s24 = smov [#allocation4]   ;;  %s490_s28 = scalar_lea.hbm %s659_s0, 2048 }
   0x2   :  { %s19_s25 = sshll.u32 %s538_s24, 4  ;;  %p491_p0 = scmp.ne.s32.totalorder %s659_s0, %s490_s28  ;;  %s20_s25 = int_to_ptr.vmem [resolvable:$true] %s19_s25 }
   0x3   :  { %p494_p1 = scmp.lt.u32.totalorder %s490_s28, %s659_s0 }
   0x5   :  { %p496_p2 = pnand %p494_p1, %p491_p0 }
   0x7   :  { %499 = shalt.err (!%p496_p2)
}
   0x8   :  { %s500_s10 = scalar_lea.vmem %s20_s25, 2048  ;;  %p505_p4 = scmp.lt.s32.totalorder %s20_s25, %s20_s25 }
   0x9   :  { %p501_p3 = scmp.ne.s32.totalorder %s20_s25, %s500_s10  ;;  %p506_p5 = scmp.lt.s32.totalorder %s500_s10, %s500_s10 }
   0xb   :  { %p507_p6 = por %p506_p5, %p505_p4 }
   0xd   :  { %p508_p7 = pnand %p507_p6, %p501_p3 }
   0xf   :  { %511 = shalt.err (!%p508_p7)
}
  0x10   :  { %s539_s11 = smov 256   ;;  %s540_s12 = smov 16  }
  0x11   :  { %25 = dma.hbm_to_vmem [thread:$0]  %s659_s0, 2048, %s20_s25, [#allocation5], %s539_s11, %s539_s11, %s540_s12  }
  0x12   :  { %534 = dma.done.wait [#allocation5], 2048  }
  0x13   :  { %535 = vsyncadd [#allocation5], 4294965248  ;;  %v56_v0 = vld [vmem:[#allocation4 + $0x40] sm:$0xff]  ;;  %v57_v1 = vld [vmem:[#allocation4 + $0x48] sm:$0xff]  ;;  %vm45_vm0 = vcmask 254976   ;;  %v541_v32 = vmov 0.0   ;;  %v97_v43 = vlaneseq }
  0x14   :  { %v48_v2 = vld [vmem:[#allocation4] sm:$0xff]  ;;  %v162_v3 = vadd.f32 %v57_v1, %v56_v0  ;;  %v49_v4 = vld [vmem:[#allocation4 + $0x8] sm:$0xff]  ;;  %v58_v5 = vld [vmem:[#allocation4 + $0x50] sm:$0xff]  ;;  %v77_v21 = vmax.f32 %v56_v0, %v57_v1  ;;  %47 = vst.msk [vmem:[#allocation3] sm:$0x3] %vm45_vm0, %v541_v32  ;;  %467 = vmatprep.subr.mxu1 %v541_v32  ;;  %v542_v33 = vmov -inf  }
  0x15   :  { %v59_v6 = vld [vmem:[#allocation4 + $0x58] sm:$0xff]  ;;  %v150_v7 = vadd.f32 %v49_v4, %v48_v2  ;;  %v50_v8 = vld [vmem:[#allocation4 + $0x10] sm:$0xff]  ;;  %v60_v12 = vld [vmem:[#allocation4 + $0x60] sm:$0xff]  ;;  %v65_v19 = vmax.f32 %v48_v2, %v49_v4  ;;  %46 = vst.msk [vmem:[#allocation2] sm:$0x3] %vm45_vm0, %v542_v33  ;;  %v543_v37 = vmov 0.0|0.0  }
  0x16   :  { %v51_v9 = vld [vmem:[#allocation4 + $0x18] sm:$0xff]  ;;  %163 = vadd.xlane.f32.xlu1 %v162_v3  ;;  %v165_v10 = vadd.f32 %v59_v6, %v58_v5  ;;  %v61_v13 = vld [vmem:[#allocation4 + $0x68] sm:$0xff]  ;;  %v52_v14 = vld [vmem:[#allocation4 + $0x20] sm:$0xff]  ;;  %v80_v20 = vmax.f32 %v58_v5, %v59_v6  ;;  %472 = vmatprep.subr.bf16.mxu0 %v543_v37  ;;  %vm544_vm1 = vmmov 0   ;;  %v98_v46 = vand.u32 127, %v97_v43 }
  0x17   :  { %151 = vadd.xlane.f32.xlu0 %v150_v7  ;;  %v153_v11 = vadd.f32 %v51_v9, %v50_v8  ;;  %v53_v15 = vld [vmem:[#allocation4 + $0x28] sm:$0xff]  ;;  %v168_v16 = vadd.f32 %v61_v13, %v60_v12  ;;  %v68_v18 = vmax.f32 %v50_v8, %v51_v9  ;;  %v62_v22 = vld [vmem:[#allocation4 + $0x70] sm:$0xff]  ;;  %v63_v23 = vld [vmem:[#allocation4 + $0x78] sm:$0xff]  ;;  %v83_v28 = vmax.f32 %v60_v12, %v61_v13 }
  0x18   :  { %v156_v17 = vadd.f32 %v53_v15, %v52_v14  ;;  %v54_v24 = vld [vmem:[#allocation4 + $0x30] sm:$0xff]  ;;  %v55_v25 = vld [vmem:[#allocation4 + $0x38] sm:$0xff]  ;;  %v171_v26 = vadd.f32 %v63_v23, %v62_v22  ;;  %v71_v29 = vmax.f32 %v52_v14, %v53_v15  ;;  %v86_v30 = vmax.f32 %v62_v22, %v63_v23  ;;  %v252_v35 = vld [vmem:[%s662_s3 + $0x8] sm:$0xff]  ;;  %464 = vmatprep.mubr.msk.f32.mxu0 %vm544_vm1, %v541_v32 }
  0x19   :  { %v159_v27 = vadd.f32 %v55_v25, %v54_v24  ;;  %v74_v31 = vmax.f32 %v54_v24, %v55_v25  ;;  %v251_v34 = vld [vmem:[%s662_s3] sm:$0xff]  ;;  %v253_v36 = vld [vmem:[%s662_s3 + $0x10] sm:$0xff]  ;;  %v254_v39 = vld [vmem:[%s662_s3 + $0x18] sm:$0xff]  ;;  %469 = vmatprep.mubr.msk.f32.mxu1 %vm544_vm1, %v541_v32  ;;  %v103_v48 = vadd.s32 4294967288, %v98_v46  ;;  %v110_v50 = vadd.s32 4294967280, %v98_v46 }
  0x1a   :  { %166 = vadd.xlane.f32.xlu1 %v165_v10  ;;  %v473_v38 = vpack.c.bf16 %v252_v35, %v251_v34  ;;  %v476_v40 = vpack.c.bf16 %v254_v39, %v253_v36  ;;  %v100_v51 = vshrl.u32 %v97_v43, 7  ;;  %v117_v55 = vadd.s32 4294967272, %v98_v46  ;;  %v441_v39 = vld [vmem:[%s660_s1] ss:$0 sm:$0xff] }
  0x1b   :  { %154 = vadd.xlane.f32.xlu0 %v153_v11  ;;  %vm108_vm2 = vcmask 130112   ;;  %vm115_vm3 = vcmask 195712   ;;  %vm122_vm4 = vcmask 261312   ;;  %vm143_vm5 = vcmask 1041409   ;;  %v149_v12 = vld [vmem:[#allocation3] sm:$0x3] }
  0x1c   :  { %474 = vmatpush3.bf16.msra.mxu0 %v473_v38  ;;  %v106_v53 = vsub.s32 %v103_v48, %v100_v51  ;;  %v113_v56 = vsub.s32 %v110_v50, %v100_v51  ;;  %v101_v57 = vsub.s32 %v98_v46, %v100_v51  ;;  %v120_v61 = vsub.s32 %v117_v55, %v100_v51  ;;  %v64_v33 = vld [vmem:[#allocation2] sm:$0x3] }
  0x1d   :  { %475 = vmatprep.subr.bf16.mxu0 %v543_v37  ;;  %vm262_vm6 = vcmask 261120   ;;  %v444_v48 = vld [vmem:[%s663_s4] ss:$0 sm:$0xff]  ;;  %vm345_vm7 = vcmask 64512  }
  0x1e   :  { %169 = vadd.xlane.f32.xlu1 %v168_v16 }
  0x1f   :  { %157 = vadd.xlane.f32.xlu0 %v156_v17 }
  0x20   :  { %477 = vmatpush3.bf16.msra.mxu0 %v476_v40  ;;  %v442_v40 = vld [vmem:[%s660_s1 + $0x1] ss:$0 sm:$0xff] }
  0x22   :  { %69 = vmax.xlane.f32.xlu1 %v68_v18 }
  0x23   :  { %66 = vmax.xlane.f32.xlu0 %v65_v19 }
  0x26   :  { %81 = vmax.xlane.f32.xlu1 %v80_v20 }
  0x27   :  { %78 = vmax.xlane.f32.xlu0 %v77_v21 }
  0x2a   :  { %172 = vadd.xlane.f32.xlu1 %v171_v26 }
  0x2b   :  { %160 = vadd.xlane.f32.xlu0 %v159_v27 }
  0x2e   :  { %84 = vmax.xlane.f32.xlu1 %v83_v28 }
  0x2f   :  { %72 = vmax.xlane.f32.xlu0 %v71_v29 }
  0x32   :  { %87 = vmax.xlane.f32.xlu1 %v86_v30 }
  0x33   :  { %75 = vmax.xlane.f32.xlu0 %v74_v31 }
  0xa3   :  { %v164_v41 = vpop.xlane.xlu1 %163 }
  0xa4   :  { %v152_v42 = vpop.xlane.xlu0 %151  ;;  %v204_v0 = vrot.slane %v164_v41, %v101_v57 }
  0xa5   :  { %v185_v2 = vrot.slane %v152_v42, %v101_v57 }
  0xa7   :  { %v167_v44 = vpop.xlane.xlu1 %166 }
  0xa8   :  { %v155_v45 = vpop.xlane.xlu0 %154  ;;  %v208_v59 = vrot.slane %v167_v44, %v106_v53  ;;  %v443_v44 = vld [vmem:[%s661_s2] ss:$0 sm:$0xff] }
  0xa9   :  { %v189_v62 = vrot.slane %v155_v45, %v106_v53 }
  0xaa   :  { %v209_v4 = vsel %vm108_vm2, %v208_v59, %v204_v0 }
  0xab   :  { %v170_v47 = vpop.xlane.xlu1 %169  ;;  %v190_v7 = vsel %vm108_vm2, %v189_v62, %v185_v2 }
  0xac   :  { %v158_v49 = vpop.xlane.xlu0 %157  ;;  %v213_v63 = vrot.slane %v170_v47, %v113_v56  ;;  %v337_v47 = vld [vmem:[%s664_s5] sm:$0xff]  ;;  %s545_s5 = smov [#allocation7]  }
  0xad   :  { %v194_v1 = vrot.slane %v158_v49, %v113_v56  ;;  %468 = vmatpush3.msra.mxu1 %v337_v47  ;;  %s432_s4 = sshll.u32 %s545_s5, 4  ;;  %s433_s4 = int_to_ptr.vmem [resolvable:$true] %s432_s4 }
  0xae   :  { %v214_v8 = vsel %vm115_vm3, %v213_v63, %v209_v4  ;;  %s512_s8 = scalar_lea.vmem %s433_s4, 32  ;;  %p517_p9 = scmp.lt.s32.totalorder %s433_s4, %s433_s4 }
  0xaf   :  { %v70_v52 = vpop.xlane.xlu1 %69  ;;  %v195_v10 = vsel %vm115_vm3, %v194_v1, %v190_v7  ;;  %p513_p8 = scmp.ne.s32.totalorder %s433_s4, %s512_s8  ;;  %p518_p10 = scmp.lt.s32.totalorder %s512_s8, %s512_s8 }
  0xb0   :  { %v67_v54 = vpop.xlane.xlu0 %66  ;;  %v107_v19 = vrot.slane %v70_v52, %v106_v53 }
  0xb1   :  { %v102_v20 = vrot.slane %v67_v54, %v101_v57  ;;  %p519_p11 = por %p518_p10, %p517_p9 }
  0xb3   :  { %v82_v58 = vpop.xlane.xlu1 %81  ;;  %v109_v28 = vsel %vm108_vm2, %v107_v19, %v102_v20  ;;  %p520_p12 = pnand %p519_p11, %p513_p8 }
  0xb4   :  { %v79_v60 = vpop.xlane.xlu0 %78  ;;  %v131_v15 = vrot.slane %v82_v58, %v106_v53  ;;  %v446_v53 = vld [vmem:[%s665_s6] ss:$0 sm:$0xff] }
  0xb5   :  { %v127_v16 = vrot.slane %v79_v60, %v101_v57 }
  0xb7   :  { %v173_v3 = vpop.xlane.xlu1 %172  ;;  %v132_v25 = vsel %vm108_vm2, %v131_v15, %v127_v16 }
  0xb8   :  { %v218_v5 = vrot.slane %v173_v3, %v120_v61  ;;  %v161_v6 = vpop.xlane.xlu0 %160 }
  0xb9   :  { %v199_v9 = vrot.slane %v161_v6, %v120_v61 }
  0xba   :  { %v219_v11 = vsel %vm122_vm4, %v218_v5, %v214_v8 }
  0xbb   :  { %v200_v13 = vsel %vm122_vm4, %v199_v9, %v195_v10  ;;  %v85_v14 = vpop.xlane.xlu1 %84 }
  0xbc   :  { %v220_v17 = vsel %vm143_vm5, %v219_v11, %v200_v13  ;;  %v73_v18 = vpop.xlane.xlu0 %72  ;;  %v136_v21 = vrot.slane %v85_v14, %v113_v56 }
  0xbd   :  { %v222_v22 = vadd.f32 %v220_v17, %v149_v12  ;;  %v114_v23 = vrot.slane %v73_v18, %v113_v56 }
  0xbe   :  { %v137_v29 = vsel %vm115_vm3, %v136_v21, %v132_v25 }
  0xbf   :  { %v88_v24 = vpop.xlane.xlu1 %87  ;;  %223 = vst.msk [vmem:[#allocation3] sm:$0x3] %vm45_vm0, %v222_v22  ;;  %v116_v31 = vsel %vm115_vm3, %v114_v23, %v109_v28 }
  0xc0   :  { %v141_v26 = vrot.slane %v88_v24, %v120_v61  ;;  %v76_v27 = vpop.xlane.xlu0 %75 }
  0xc1   :  { %v121_v30 = vrot.slane %v76_v27, %v120_v61 }
  0xc2   :  { %v142_v32 = vsel %vm122_vm4, %v141_v26, %v137_v29 }
  0xc3   :  { %v123_v34 = vsel %vm122_vm4, %v121_v30, %v116_v31 }
  0xc4   :  { %v144_v35 = vsel %vm143_vm5, %v142_v32, %v123_v34 }
  0xc5   :  { %v146_v36 = vmax.f32 %v64_v33, %v144_v35 }
  0xc6   :  { %v228_v37 = vld [vmem:[#allocation3] sm:$0x3] }
  0xc7   :  { %148 = vst.msk [vmem:[#allocation2] sm:$0x3] %vm45_vm0, %v146_v36  ;;  %v229_v38 = vmul.f32 0.00390625, %v228_v37 }
  0xc9   :  { %v241_v43 = vmul.f32 %v442_v40, %v229_v38 }
  0xce   :  { %v227_v41 = vld [vmem:[#allocation2] sm:$0x3] }
  0xcf   :  { %v235_v42 = vmul.f32 %v441_v39, %v227_v41 }
  0xd1   :  { %v242_v45 = vadd.f32 %v241_v43, %v235_v42 }
  0xd3   :  { %v250_v46 = vadd.f32 %v443_v44, %v242_v45 }
  0xd5   :  { %465 = vmatmul.mubr.msk.f32.vlgmr.msra.gmra.mrb[0].mxu0 %vm262_vm6, %v250_v46 }
 0x1a8   :  { %v332_v49 = vpop.f32.mrb[0].mxu0 }
 0x1a9   :  { %v333_v50 = vadd.f32 %v444_v48, %v332_v49  ;;  %v466_v51 = vpop.f32.mrb[1].mxu0 }
 0x1ab   :  { %v336_v52 = vmax.f32 %v333_v50, 0.0 }
 0x1ad   :  { %470 = vmatmul.mubr.msk.f32.vlgmr.msra.gmra.mrb[0].mxu1 %vm345_vm7, %v336_v52 }
 0x280   :  { %v415_v54 = vpop.f32.mrb[0].mxu1 }
 0x281   :  { %v416_v55 = vadd.f32 %v446_v53, %v415_v54  ;;  %v471_v56 = vpop.f32.mrb[1].mxu1 }
 0x283   :  { %v448_v57 = vmul.f32 -1.442695, %v416_v55 }
 0x285   :  { %486 = vpow2.f32 %v448_v57 }
 0x28f   :  { %v487_v58 = vpop.eup %486 }
 0x290   :  { %v422_v59 = vadd.f32 1.0, %v487_v58 }
 0x292   :  { %488 = vrcp.f32 %v422_v59 }
 0x29c   :  { %v489_v60 = vpop.eup %488 }
 0x29d   :  { %425 = vst.msk [vmem:[#allocation7] sm:$0x3] %vm45_vm0, %v489_v60 }
 0x29e   :  { %523 = shalt.err (!%p520_p12)
}
 0x29f   :  { %s524_s10 = scalar_lea.hbm %s666_s7, 32 }
 0x2a0   :  { %p525_p13 = scmp.ne.s32.totalorder %s666_s7, %s524_s10  ;;  %p528_p0 = scmp.lt.u32.totalorder %s524_s10, %s666_s7 }
 0x2a2   :  { %p530_p1 = pnand %p528_p0, %p525_p13 }
 0x2a4   :  { %533 = shalt.err (!%p530_p1)
}
 0x2a5   :  { %435 = dma.vmem_to_hbm [thread:$0]  %s433_s4, 32, %s666_s7, [#allocation6]  }
 0x2a6   :  { %536 = dma.done.wait [#allocation6], 32  }
 0x2a7   :  { %537 = vsyncadd [#allocation6], 4294967264 }
 0x2a8   :  { %439 = vsyncpa [#allocation5], 1 }
 0x2a9   :  { %440 = vsyncpa [#allocation6], 1 }

</bundles_post_ra>
